<compile_context>
chip_gen: v5e
topology: v5e:2x2
jax: 0.10.0
libtpu: 0.0.40
codegen_flags: <defaults>
</compile_context>

<pallas_src>
import functools

import jax
import jax.numpy as jnp
from jax.experimental import pallas as pl
from jax.experimental.pallas import tpu as pltpu


def _cdiv(a: int, b: int) -> int:
    return -(-a // b)


def _round_up(n: int, m: int) -> int:
    return _cdiv(n, m) * m


def _tpu_generation() -> int:
    """Best-effort TPU generation from device_kind; 0 if unknown."""
    try:
        kind = jax.devices()[0].device_kind.lower()
    except Exception:  # pragma: no cover - defensive
        return 0
    for g in (7, 6, 5, 4):
        if f"v{g}" in kind:
            return g
    return 0


def _silu_jnp(v: jax.Array) -> jax.Array:
    vf = v.astype(jnp.float32)
    return (vf * jax.nn.sigmoid(vf)).astype(v.dtype)


def _silu_kernel(x_ref, o_ref, *, approx: bool):
    # f32 compute (stand-in for the reference's float64).
    x = x_ref[...].astype(jnp.float32)
    if approx:
        # One exp + one approx EUP reciprocal per element; keeps the EUP slot
        # from binding for narrow dtypes on high-bandwidth parts (v7x/bf16).
        y = x * pl.reciprocal(1.0 + jnp.exp(-x), approx=True)
    else:
        y = x * jax.nn.sigmoid(x)
    o_ref[...] = y.astype(o_ref.dtype)


def silu(x: jax.Array) -> jax.Array:
    """SiLU applied elementwise; preserves shape and dtype of `x`."""
    orig_shape = x.shape
    dtype = x.dtype
    total = x.size
    if total == 0:
        return x

    itemsize = jnp.dtype(dtype).itemsize
    # Sub-32-bit dtypes pack along sublanes: 8 (4-byte), 16 (2-byte), 32 (1-byte).
    sub_mult = 8 * max(1, 4 // itemsize)

    gen = _tpu_generation()
    num_cores = 2 if gen >= 7 else 1                      # v7x has 2 TCs/chip
    tile_bytes = (4 if gen >= 7 else 2) * 1024 * 1024     # per-block target

    x_flat = x.reshape(-1)
    rem = total % 128
    aligned = total - rem

    if aligned == 0:
        # Tiny (<128 elements): not worth a kernel launch.
        return _silu_jnp(x_flat).reshape(orig_shape)

    # Widest lane dim (multiple of 128) dividing the aligned prefix, preferring
    # one that leaves at least `sub_mult` rows.
    lanes = 0
    for cand in (2048, 1024, 512, 256, 128):
        if aligned % cand == 0 and aligned // cand >= sub_mult:
            lanes = cand
            break
    if lanes == 0:
        for cand in (2048, 1024, 512, 256, 128):
            if aligned % cand == 0:
                lanes = cand
                break

    rows = aligned // lanes
    x2d = (x_flat[:aligned] if rem else x_flat).reshape(rows, lanes)

    # dtype-aware tile rows targeting `tile_bytes` per block.
    target_rows = max(
        sub_mult,
        (tile_bytes // (lanes * itemsize)) // sub_mult * sub_mult,
    )
    block_rows = min(rows, target_rows)

    # Megacore split: only on 2-TC parts, aiming for >=4 steps per core so
    # intra-core DMA pipelining still happens.  Never split on single-TC parts.
    if num_cores >= 2:
        steps = _cdiv(rows, block_rows)
        want = 4 * num_cores
        if steps < want:
            cand_rows = _round_up(_cdiv(rows, want), sub_mult)
            if (cand_rows >= sub_mult
                    and cand_rows < block_rows
                    and cand_rows * lanes * itemsize >= 512 * 1024):
                block_rows = cand_rows
            elif steps == 1 and rows >= 2 * sub_mult:
                # Too small for deep pipelining; at least give each core work.
                block_rows = _round_up(_cdiv(rows, 2), sub_mult)

    grid_steps = _cdiv(rows, block_rows)

    # Grid-axis semantics: explicit cross-core sharding on v7x, plain parallel
    # elsewhere (parallel vs arbitrary has near-zero codegen impact on 1-TC).
    if gen >= 7 and grid_steps >= 2:
        dim_sem = (pltpu.CORE_PARALLEL,)
    else:
        dim_sem = ("parallel",)

    cp_kwargs = dict(dimension_semantics=dim_sem)
    if gen >= 7:
        # 4 MiB tiles * (2 in + 2 out + 1 extra in buffer) ~= 20 MiB; give
        # headroom under v7x's 64 MiB physical VMEM.
        cp_kwargs["vmem_limit_bytes"] = 40 * 1024 * 1024

    in_spec_kwargs = {}
    if gen >= 7:
        # ~1 us steps on v7x: a third input buffer smooths DMA issue jitter.
        in_spec_kwargs["pipeline_mode"] = pl.Buffered(3)

    approx = itemsize < 4 and jnp.issubdtype(dtype, jnp.floating)

    out2d = pl.pallas_call(
        functools.partial(_silu_kernel, approx=approx),
        out_shape=jax.ShapeDtypeStruct((rows, lanes), dtype),
        grid=(grid_steps,),
        in_specs=[pl.BlockSpec((block_rows, lanes), lambda i: (i, 0),
                               **in_spec_kwargs)],
        out_specs=pl.BlockSpec((block_rows, lanes), lambda i: (i, 0)),
        compiler_params=pltpu.CompilerParams(**cp_kwargs),
    )(x2d)

    if rem:
        # TODO(synk): masking the tail store in-kernel (pltpu.store + lane
        # mask) would avoid this final concatenate copy; the tail itself is
        # < 128 elements so it's computed with plain jnp.
        tail = _silu_jnp(x_flat[aligned:])
        return jnp.concatenate([out2d.reshape(-1), tail]).reshape(orig_shape)
    return out2d.reshape(orig_shape)


if __name__ == "__main__":
    key = jax.random.PRNGKey(0)
    # Small NCHW-style input consistent with the module's usage.
    x = jax.random.normal(key, (2, 4, 16, 16), dtype=jnp.float32)

    out = jax.block_until_ready(silu(x))

    xf = x.astype(jnp.float32)
    ref = (xf * jax.nn.sigmoid(xf)).astype(x.dtype)
    assert out.shape == x.shape and out.dtype == x.dtype
    assert jnp.allclose(out, ref, atol=1e-6, rtol=1e-6)

    # bf16 path (approx-reciprocal kernel branch, 16-sublane tiling).
    xb = x.astype(jnp.bfloat16)
    outb = jax.block_until_ready(silu(xb))
    xbf = xb.astype(jnp.float32)
    refb = (xbf * jax.nn.sigmoid(xbf)).astype(jnp.bfloat16)
    assert outb.shape == xb.shape and outb.dtype == xb.dtype
    assert jnp.allclose(
        outb.astype(jnp.float32), refb.astype(jnp.float32), atol=2e-2, rtol=2e-2
    )

    # Ragged (non-128-divisible) size: aligned-prefix kernel + jnp tail.
    xr = jax.random.normal(jax.random.PRNGKey(1), (1000,), dtype=jnp.float32)
    outr = jax.block_until_ready(silu(xr))
    refr = xr * jax.nn.sigmoid(xr)
    assert outr.shape == xr.shape and outr.dtype == xr.dtype
    assert jnp.allclose(outr, refr, atol=1e-6, rtol=1e-6)

    print("KERNEL_OK")
</pallas_src>

<mosaic_0001>
module attributes {stable_mosaic.version = 11 : i64} {
  func.func @_silu_kernel(%arg0: i32, %arg1: memref<8x256xf32, #tpu.memory_space<vmem>>, %arg2: memref<8x256xf32, #tpu.memory_space<vmem>>) attributes {dimension_semantics = [#tpu.dimension_semantics<parallel>], iteration_bounds = array<i64: 1>, scalar_prefetch = 0 : i64, scratch_operands = 0 : i64, tpu.core_type = #tpu.core_type<tc>, window_params = [{transform_indices = @transform_0, window_bounds = array<i64: 8, 256>}, {transform_indices = @transform_1, window_bounds = array<i64: 8, 256>}]} {
    %c0 = arith.constant 0 : index
    %c0_0 = arith.constant 0 : index
    %0 = vector.load %arg1[%c0, %c0_0] : memref<8x256xf32, #tpu.memory_space<vmem>>, vector<8x256xf32>
    %1 = arith.negf %0 : vector<8x256xf32>
    %2 = math.exp %1 : vector<8x256xf32>
    %cst = arith.constant 1.000000e+00 : f32
    %3 = vector.broadcast %cst : f32 to vector<8x256xf32>
    %4 = arith.addf %3, %2 : vector<8x256xf32>
    %5 = arith.divf %3, %4 : vector<8x256xf32>
    %6 = arith.mulf %0, %5 : vector<8x256xf32>
    %c0_1 = arith.constant 0 : index
    %c0_2 = arith.constant 0 : index
    %7 = vector.load %arg2[%c0_1, %c0_2] : memref<8x256xf32, #tpu.memory_space<vmem>>, vector<8x256xf32>
    tpu.vector_store %arg2[%c0_1, %c0_2], %6 {strides = array<i32>} : memref<8x256xf32, #tpu.memory_space<vmem>>, vector<8x256xf32>,
    return
  }
  func.func @transform_0(%arg0: i32) -> (i32, i32) {
    %c0_i32 = arith.constant 0 : i32
    %c0_i32_0 = arith.constant 0 : i32
    return %arg0, %c0_i32 : i32, i32
  }
  func.func @transform_1(%arg0: i32) -> (i32, i32) {
    %c0_i32 = arith.constant 0 : i32
    %c0_i32_0 = arith.constant 0 : i32
    return %arg0, %c0_i32 : i32, i32
  }
}

</mosaic_0001>

<bundles_post_ra>
// kernel: tpu_custom_call.1
= control target key start
LH: loop header
LB: loop body
LE: loop exit
PB: predicated region body
PF: predicated region fallthrough
CT: control target
= control target key end

     0   :  { %6 = vsyncpa [#allocation3], 0  ;;  %s166_s0 = inlined_call_operand.hbm [shape: f32[8,256], index: 0, kind: input, shape index: {}]   ;;  %s167_s1 = inlined_call_operand.hbm [shape: f32[8,256], index: 1, kind: output, shape index: {}]  }
   0x1   :  { %7 = vsyncpa [#allocation4], 0  ;;  %s13_s8 = sshll.u32 %s166_s0, 4  ;;  %s148_s9 = smov [#allocation2]   ;;  %s14_s8 = int_to_ptr.hbm [resolvable:$true] %s13_s8 }
   0x2   :  { %s15_s10 = sshll.u32 %s148_s9, 4  ;;  %s16_s10 = int_to_ptr.vmem [resolvable:$true] %s15_s10 }
   0x3   :  { %18 = dma.hbm_to_vmem [thread:$0]  %s14_s8, 256, %s16_s10, [#allocation3]  }
   0x4   :  { %144 = dma.done.wait [#allocation3], 256  }
   0x5   :  { %145 = vsyncadd [#allocation3], 4294967040  ;;  %v23_v0 = vld [vmem:[#allocation2] sm:$0xff]  ;;  %v24_v1 = vld [vmem:[#allocation2 + $0x8] sm:$0xff]  ;;  %s149_s0 = smov [#allocation5]   ;;  %s74_s14 = sshll.u32 %s167_s1, 4  ;;  %s75_s14 = int_to_ptr.hbm [resolvable:$true] %s74_s14 }
   0x6   :  { %v84_v2 = vmul.f32 -1.442695, %v23_v0  ;;  %v85_v3 = vmul.f32 -1.442695, %v24_v1  ;;  %s72_s11 = sshll.u32 %s149_s0, 4  ;;  %s73_s11 = int_to_ptr.vmem [resolvable:$true] %s72_s11 }
   0x8   :  { %88 = vpow2.f32 %v84_v2 }
   0x9   :  { %90 = vpow2.f32 %v85_v3 }
   0xe   :  { %v89_v4 = vpop.eup %88 }
   0xf   :  { %v91_v5 = vpop.eup %90  ;;  %v31_v6 = vadd.f32 1.0, %v89_v4 }
  0x10   :  { %v32_v7 = vadd.f32 1.0, %v91_v5 }
  0x11   :  { %92 = vrcp.f32 %v31_v6  ;;  %vm38_vm0 = vweird.f32 %v31_v6  ;;  %v44_v11 = vand.u32 2147483648, %v31_v6  ;;  %v42_v14 = vand.u32 2147483647, %v31_v6 }
  0x12   :  { %94 = vrcp.f32 %v32_v7  ;;  %v59_v15 = vand.u32 2147483648, %v32_v7  ;;  %vm53_vm2 = vweird.f32 %v32_v7  ;;  %v57_v17 = vand.u32 2147483647, %v32_v7 }
  0x13   :  { %v45_v19 = vor.u32 1.1754944e-38, %v44_v11  ;;  %vm43_vm5 = vcmp.eq.f32.partialorder %v42_v14, 8.507059e+37 }
  0x14   :  { %v60_v22 = vor.u32 1.1754944e-38, %v59_v15  ;;  %vm58_vm7 = vcmp.eq.f32.partialorder %v57_v17, 8.507059e+37 }
  0x17   :  { %v93_v8 = vpop.eup %92 }
  0x18   :  { %v95_v9 = vpop.eup %94  ;;  %v34_v10 = vmul.f32 %v93_v8, %v31_v6  ;;  %vm39_vm1 = vweird.f32 %v93_v8 }
  0x19   :  { %v49_v12 = vmul.f32 %v95_v9, %v32_v7  ;;  %vm54_vm3 = vweird.f32 %v95_v9  ;;  %vm40_vm4 = vmor %vm38_vm0, %vm39_vm1 }
  0x1a   :  { %v35_v13 = vsub.f32 1.0, %v34_v10  ;;  %vm55_vm6 = vmor %vm53_vm2, %vm54_vm3 }
  0x1b   :  { %v50_v16 = vsub.f32 1.0, %v49_v12 }
  0x1c   :  { %v36_v18 = vmul.f32 %v93_v8, %v35_v13 }
  0x1d   :  { %v51_v20 = vmul.f32 %v95_v9, %v50_v16 }
  0x1e   :  { %v37_v21 = vadd.f32 %v93_v8, %v36_v18 }
  0x1f   :  { %v52_v23 = vadd.f32 %v95_v9, %v51_v20 }
  0x20   :  { %v41_v24 = vsel %vm40_vm4, %v93_v8, %v37_v21 }
  0x21   :  { %v46_v25 = vsel %vm43_vm5, %v45_v19, %v41_v24  ;;  %v56_v26 = vsel %vm55_vm6, %v95_v9, %v52_v23 }
  0x22   :  { %v63_v27 = vmul.f32 %v46_v25, %v23_v0  ;;  %v61_v28 = vsel %vm58_vm7, %v60_v22, %v56_v26 }
  0x23   :  { %v64_v29 = vmul.f32 %v61_v28, %v24_v1 }
  0x24   :  { %65 = vst [vmem:[#allocation5] sm:$0xff] %v63_v27 }
  0x25   :  { %66 = vst [vmem:[#allocation5 + $0x8] sm:$0xff] %v64_v29 }
  0x26   :  { %77 = dma.vmem_to_hbm [thread:$0]  %s73_s11, 256, %s75_s14, [#allocation4]  }
  0x27   :  { %146 = dma.done.wait [#allocation4], 256  }
  0x28   :  { %147 = vsyncadd [#allocation4], 4294967040 }
  0x29   :  { %82 = vsyncpa [#allocation3], 1 }
  0x2a   :  { %83 = vsyncpa [#allocation4], 1 }

</bundles_post_ra>
